<compile_context>
chip_gen: v7x
topology: tpu7x:2x2x1
jax: 0.10.0
libtpu: 0.0.40
codegen_flags: <defaults>
</compile_context>

<pallas_src>
import jax
import jax.numpy as jnp
from jax.experimental import pallas as pl
from jax.experimental.pallas import tpu as pltpu


def _round_up(x, m):
    return (x + m - 1) // m * m


# Explicit capability check instead of a broad try/except around pallas_call.
_HAS_BUFFERED = hasattr(pl, "Buffered")


def _resident_spec(block_shape, index_map):
    """Weight-style block: one resident copy (no double buffering) when supported."""
    if _HAS_BUFFERED:
        return pl.BlockSpec(block_shape, index_map, pipeline_mode=pl.Buffered(1))
    return pl.BlockSpec(block_shape, index_map)


def _vmem_capacity_bytes():
    """Per-TensorCore VMEM (128 MiB v5e/v6e, 64 MiB v7x); conservative fallback."""
    try:
        return int(pltpu.get_tpu_info().vmem_capacity_bytes)
    except Exception:  # hardware query unavailable (e.g. off-TPU AOT tracing)
        return 64 << 20


def _lora_qkv_kernel(x_ref, w_ref, b_ref, aq_ref, bq_ref, av_ref, bv_ref, out_ref):
    """One (tm, dim) column block of qkv: j==0 -> Q (+LoRA_q), j==1 -> K, j==2 -> V (+LoRA_v)."""
    j = pl.program_id(0)
    cdt = w_ref.dtype

    # x arrives in its HBM dtype; cast to the compute dtype in-VMEM.
    x = x_ref[...].astype(cdt)

    # (tm, dim) column block of the fused projection, f32 MXU accumulation,
    # bias folded right here — no (tm, 3*dim) f32 temporaries are ever built.
    qkv = jnp.dot(x, w_ref[...], preferred_element_type=jnp.float32) + b_ref[...]

    @pl.when(j == 0)
    def _():  # Q block: += B_q(A_q(x))
        h = jnp.dot(x, aq_ref[...], preferred_element_type=jnp.float32).astype(cdt)
        new_q = jnp.dot(h, bq_ref[...], preferred_element_type=jnp.float32)
        out_ref[...] = (qkv + new_q).astype(out_ref.dtype)

    @pl.when(j == 1)
    def _():  # K block: plain projection
        out_ref[...] = qkv.astype(out_ref.dtype)

    @pl.when(j == 2)
    def _():  # V block: += B_v(A_v(x))
        h = jnp.dot(x, av_ref[...], preferred_element_type=jnp.float32).astype(cdt)
        new_v = jnp.dot(h, bv_ref[...], preferred_element_type=jnp.float32)
        out_ref[...] = (qkv + new_v).astype(out_ref.dtype)


def _plan_tiles(M, dim_p, r, in_bytes, out_bytes, c_bytes, tm_req):
    """Pick the token tile and vmem_limit from an explicit VMEM footprint."""
    cap = _vmem_capacity_bytes()
    budget = cap - (8 << 20)  # headroom for compiler-internal scratch

    tm = _round_up(min(tm_req, _round_up(M, 8)), 8)

    def footprint(t):
        # Resident weight blocks: one (dim, dim) column block of W_qkv, its bias
        # row and the four LoRA matrices (doubled if we can't single-buffer).
        resident = (dim_p * dim_p * c_bytes
                    + dim_p * 4
                    + 4 * dim_p * r * c_bytes)
        if not _HAS_BUFFERED:
            resident *= 2
        # Double-buffered x / out tiles.
        tiles = 2 * t * dim_p * (in_bytes + out_bytes)
        # In-kernel temporaries: bf16 x copy, f32 qkv block, f32 LoRA add, f32 h.
        temps = t * dim_p * (c_bytes + 2 * 4) + 2 * t * r * 4
        return resident + tiles + temps

    while tm > 8 and footprint(tm) > budget:
        tm = _round_up(max(tm // 2, 8), 8)

    vmem_limit = int(min(max(footprint(tm) + (4 << 20), 16 << 20), cap))
    return tm, vmem_limit


def lora_qkv(x, w_qkv, b_qkv, a_q, b_q, a_v, b_v, *, tm=512,
             compute_dtype=jnp.bfloat16, out_dtype=None):
    """Fused QKV + LoRA(Q,V).

    x: (B, N, dim). Weights stored (in, out), i.e. transposed vs. torch Linear.
    tm=512 is a good default on v5e/v6e; the planner shrinks it automatically
    when the footprint would exceed the chip's per-core VMEM (e.g. v7x).
    out_dtype: pass jnp.bfloat16 on v5e if downstream allows (halves writeback).
    Weight re-packing/casts below fold to constants under jit (or precompute once).
    """
    B, N, dim = x.shape
    r = a_q.shape[1]
    M = B * N
    out_dtype = x.dtype if out_dtype is None else out_dtype

    dim_p = _round_up(dim, 128)  # lane-dense stores / aligned MXU tiles
    in_bytes = jnp.dtype(x.dtype).itemsize
    out_bytes = jnp.dtype(out_dtype).itemsize
    c_bytes = jnp.dtype(compute_dtype).itemsize

    tm, vmem_limit = _plan_tiles(M, dim_p, r, in_bytes, out_bytes, c_bytes, tm)
    M_pad = _round_up(M, tm)

    # x stays in its original dtype (cast happens inside the kernel).
    x2d = jnp.pad(x.reshape(M, dim), ((0, M_pad - M), (0, dim_p - dim)))

    # (3, dim_p, dim_p) Q/K/V column blocks of W_qkv; zero-padding keeps math exact.
    w3 = w_qkv.reshape(dim, 3, dim).transpose(1, 0, 2)
    w3 = jnp.pad(w3, ((0, 0), (0, dim_p - dim), (0, dim_p - dim))).astype(compute_dtype)
    bias3 = jnp.pad(b_qkv.reshape(3, 1, dim),
                    ((0, 0), (0, 0), (0, dim_p - dim))).astype(jnp.float32)
    aq = jnp.pad(a_q, ((0, dim_p - dim), (0, 0))).astype(compute_dtype)
    av = jnp.pad(a_v, ((0, dim_p - dim), (0, 0))).astype(compute_dtype)
    bq = jnp.pad(b_q, ((0, 0), (0, dim_p - dim))).astype(compute_dtype)
    bv = jnp.pad(b_v, ((0, 0), (0, dim_p - dim))).astype(compute_dtype)

    # Grid: outer axis = Q/K/V column block (weight block resident per j),
    #       inner axis = token tiles (x / out pipelined with double buffering).
    grid = (3, M_pad // tm)

    in_specs = [
        pl.BlockSpec((tm, dim_p), lambda j, i: (i, 0)),          # x tile (pipelined)
        _resident_spec((None, dim_p, dim_p), lambda j, i: (j, 0, 0)),  # W column block
        _resident_spec((None, 1, dim_p), lambda j, i: (j, 0, 0)),      # bias column block
        _resident_spec((dim_p, r), lambda j, i: (0, 0)),               # A_q
        _resident_spec((r, dim_p), lambda j, i: (0, 0)),               # B_q
        _resident_spec((dim_p, r), lambda j, i: (0, 0)),               # A_v
        _resident_spec((r, dim_p), lambda j, i: (0, 0)),               # B_v
    ]
    out_spec = pl.BlockSpec((tm, dim_p), lambda j, i: (i, j))

    flops = (2 * M_pad * dim_p * 3 * dim_p          # fused QKV projection
             + 2 * M_pad * dim_p * 2 * r            # LoRA A (Q + V)
             + 2 * 2 * M_pad * r * dim_p)           # LoRA B (Q + V)
    bytes_accessed = (3 * M_pad * dim_p * in_bytes  # x read once per column block
                      + M_pad * 3 * dim_p * out_bytes
                      + 3 * dim_p * dim_p * c_bytes + 3 * dim_p * 4
                      + 4 * dim_p * r * c_bytes)

    out2d = pl.pallas_call(
        _lora_qkv_kernel,
        out_shape=jax.ShapeDtypeStruct((M_pad, 3 * dim_p), out_dtype),
        grid_spec=pltpu.PrefetchScalarGridSpec(
            num_scalar_prefetch=0,
            grid=grid,
            in_specs=in_specs,
            out_specs=out_spec,
        ),
        compiler_params=pltpu.CompilerParams(
            dimension_semantics=("parallel", "parallel"),
            vmem_limit_bytes=vmem_limit),
        cost_estimate=pl.CostEstimate(flops=int(flops), transcendentals=0,
                                      bytes_accessed=int(bytes_accessed)),
    )(x2d, w3, bias3, aq, bq, av, bv)

    out = out2d.reshape(M_pad, 3, dim_p)[:M, :, :dim].reshape(M, 3 * dim)
    return out.reshape(B, N, 3 * dim)


def _reference(x, w_qkv, b_qkv, a_q, b_q, a_v, b_v):
    """Pure-JAX f32 reference matching the PyTorch forward."""
    dim = x.shape[-1]
    qkv = jnp.einsum('bnd,de->bne', x, w_qkv) + b_qkv
    new_q = jnp.einsum('bnr,rd->bnd', jnp.einsum('bnd,dr->bnr', x, a_q), b_q)
    new_v = jnp.einsum('bnr,rd->bnd', jnp.einsum('bnd,dr->bnr', x, a_v), b_v)
    qkv = qkv.at[:, :, :dim].add(new_q)
    qkv = qkv.at[:, :, -dim:].add(new_v)
    return qkv


if __name__ == "__main__":
    B, N, dim, r = 2, 8, 32, 4

    key = jax.random.PRNGKey(0)
    ks = jax.random.split(key, 7)

    x = jax.random.normal(ks[0], (B, N, dim), dtype=jnp.float32)

    # qkv = nn.Linear(dim, 3*dim): torch weight (3*dim, dim); stored here as (dim, 3*dim)
    w_qkv = jax.random.normal(ks[1], (dim, 3 * dim), dtype=jnp.float32) * 0.05
    b_qkv = jax.random.normal(ks[2], (3 * dim,), dtype=jnp.float32) * 0.05

    # LoRA linears (bias-free), stored as (in, out)
    a_q = jax.random.normal(ks[3], (dim, r), dtype=jnp.float32) * 0.1
    b_q = jax.random.normal(ks[4], (r, dim), dtype=jnp.float32) * 0.1
    a_v = jax.random.normal(ks[5], (dim, r), dtype=jnp.float32) * 0.1
    b_v = jax.random.normal(ks[6], (r, dim), dtype=jnp.float32) * 0.1

    out = lora_qkv(x, w_qkv, b_qkv, a_q, b_q, a_v, b_v)
    out = jax.block_until_ready(out)

    ref = _reference(x, w_qkv, b_qkv, a_q, b_q, a_v, b_v)
    assert out.shape == (B, N, 3 * dim)
    # bf16 operands with f32 accumulation -> loosened tolerance vs f32 reference.
    assert jnp.allclose(out, ref, atol=2e-2, rtol=2e-2), "mismatch vs reference"

    print("KERNEL_OK")
</pallas_src>

<mosaic_0001>
module attributes {stable_mosaic.version = 11 : i64} {
  func.func @_lora_qkv_kernel(%arg0: i32, %arg1: i32, %arg2: memref<16x128xf32, #tpu.memory_space<vmem>>, %arg3: memref<1x128x128xbf16, #tpu.memory_space<vmem>>, %arg4: memref<1x1x128xf32, #tpu.memory_space<vmem>>, %arg5: memref<128x4xbf16, #tpu.memory_space<vmem>>, %arg6: memref<4x128xbf16, #tpu.memory_space<vmem>>, %arg7: memref<128x4xbf16, #tpu.memory_space<vmem>>, %arg8: memref<4x128xbf16, #tpu.memory_space<vmem>>, %arg9: memref<16x128xf32, #tpu.memory_space<vmem>>) attributes {dimension_semantics = [#tpu.dimension_semantics<parallel>, #tpu.dimension_semantics<parallel>], iteration_bounds = array<i64: 3, 1>, scalar_prefetch = 0 : i64, scratch_operands = 0 : i64, tpu.core_type = #tpu.core_type<tc>, window_params = [{transform_indices = @transform_0, window_bounds = array<i64: 16, 128>}, {pipeline_mode = #tpu.pipeline_mode<synchronous>, transform_indices = @transform_1, window_bounds = array<i64: 1, 128, 128>}, {pipeline_mode = #tpu.pipeline_mode<synchronous>, transform_indices = @transform_2, window_bounds = array<i64: 1, 1, 128>}, {pipeline_mode = #tpu.pipeline_mode<synchronous>, transform_indices = @transform_3, window_bounds = array<i64: 128, 4>}, {pipeline_mode = #tpu.pipeline_mode<synchronous>, transform_indices = @transform_4, window_bounds = array<i64: 4, 128>}, {pipeline_mode = #tpu.pipeline_mode<synchronous>, transform_indices = @transform_5, window_bounds = array<i64: 128, 4>}, {pipeline_mode = #tpu.pipeline_mode<synchronous>, transform_indices = @transform_6, window_bounds = array<i64: 4, 128>}, {transform_indices = @transform_7, window_bounds = array<i64: 16, 128>}]} {
    %c0 = arith.constant 0 : index
    %c0_0 = arith.constant 0 : index
    %0 = vector.load %arg2[%c0, %c0_0] : memref<16x128xf32, #tpu.memory_space<vmem>>, vector<16x128xf32>
    %1 = arith.truncf %0 : vector<16x128xf32> to vector<16x128xbf16>
    %c0_1 = arith.constant 0 : index
    %c0_2 = arith.constant 0 : index
    %c0_3 = arith.constant 0 : index
    %2 = vector.load %arg3[%c0_1, %c0_2, %c0_3] : memref<1x128x128xbf16, #tpu.memory_space<vmem>>, vector<1x128x128xbf16>
    %3 = vector.shape_cast %2 : vector<1x128x128xbf16> to vector<128x128xbf16>
    %cst = arith.constant dense<0.000000e+00> : vector<16x128xf32>
    %4 = tpu.matmul %1, %3, %cst {dimension_numbers = #tpu.dot_dimension_numbers<[1], [0], [0], [1], [0, 0, 1, 1], [], []>} : vector<16x128xbf16>, vector<128x128xbf16>, vector<16x128xf32> -> vector<16x128xf32>
    %c0_4 = arith.constant 0 : index
    %c0_5 = arith.constant 0 : index
    %c0_6 = arith.constant 0 : index
    %5 = vector.load %arg4[%c0_4, %c0_5, %c0_6] : memref<1x1x128xf32, #tpu.memory_space<vmem>>, vector<1x1x128xf32>
    %6 = vector.shape_cast %5 : vector<1x1x128xf32> to vector<1x128xf32>
    %7 = vector.broadcast %6 : vector<1x128xf32> to vector<16x128xf32>
    %8 = arith.addf %4, %7 : vector<16x128xf32>
    %c0_i32 = arith.constant 0 : i32
    %9 = arith.cmpi eq, %arg0, %c0_i32 : i32
    %10 = arith.extui %9 : i1 to i32
    %c0_i32_7 = arith.constant 0 : i32
    %11 = arith.cmpi ne, %10, %c0_i32_7 : i32
    scf.if %11 {
      %c0_10 = arith.constant 0 : index
      %c0_11 = arith.constant 0 : index
      %18 = vector.load %arg5[%c0_10, %c0_11] : memref<128x4xbf16, #tpu.memory_space<vmem>>, vector<128x4xbf16>
      %cst_12 = arith.constant dense<0.000000e+00> : vector<16x4xf32>
      %19 = tpu.matmul %1, %18, %cst_12 {dimension_numbers = #tpu.dot_dimension_numbers<[1], [0], [0], [1], [0, 0, 1, 1], [], []>} : vector<16x128xbf16>, vector<128x4xbf16>, vector<16x4xf32> -> vector<16x4xf32>
      %20 = arith.truncf %19 : vector<16x4xf32> to vector<16x4xbf16>
      %c0_13 = arith.constant 0 : index
      %c0_14 = arith.constant 0 : index
      %21 = vector.load %arg6[%c0_13, %c0_14] : memref<4x128xbf16, #tpu.memory_space<vmem>>, vector<4x128xbf16>
      %cst_15 = arith.constant dense<0.000000e+00> : vector<16x128xf32>
      %22 = tpu.matmul %20, %21, %cst_15 {dimension_numbers = #tpu.dot_dimension_numbers<[1], [0], [0], [1], [0, 0, 1, 1], [], []>} : vector<16x4xbf16>, vector<4x128xbf16>, vector<16x128xf32> -> vector<16x128xf32>
      %23 = arith.addf %8, %22 : vector<16x128xf32>
      %c0_16 = arith.constant 0 : index
      %c0_17 = arith.constant 0 : index
      %24 = vector.load %arg9[%c0_16, %c0_17] : memref<16x128xf32, #tpu.memory_space<vmem>>, vector<16x128xf32>
      tpu.vector_store %arg9[%c0_16, %c0_17], %23 {strides = array<i32>} : memref<16x128xf32, #tpu.memory_space<vmem>>, vector<16x128xf32>,
    } else {
    }
    %c1_i32 = arith.constant 1 : i32
    %12 = arith.cmpi eq, %arg0, %c1_i32 : i32
    %13 = arith.extui %12 : i1 to i32
    %c0_i32_8 = arith.constant 0 : i32
    %14 = arith.cmpi ne, %13, %c0_i32_8 : i32
    scf.if %14 {
      %c0_10 = arith.constant 0 : index
      %c0_11 = arith.constant 0 : index
      %18 = vector.load %arg9[%c0_10, %c0_11] : memref<16x128xf32, #tpu.memory_space<vmem>>, vector<16x128xf32>
      tpu.vector_store %arg9[%c0_10, %c0_11], %8 {strides = array<i32>} : memref<16x128xf32, #tpu.memory_space<vmem>>, vector<16x128xf32>,
    } else {
    }
    %c2_i32 = arith.constant 2 : i32
    %15 = arith.cmpi eq, %arg0, %c2_i32 : i32
    %16 = arith.extui %15 : i1 to i32
    %c0_i32_9 = arith.constant 0 : i32
    %17 = arith.cmpi ne, %16, %c0_i32_9 : i32
    scf.if %17 {
      %c0_10 = arith.constant 0 : index
      %c0_11 = arith.constant 0 : index
      %18 = vector.load %arg7[%c0_10, %c0_11] : memref<128x4xbf16, #tpu.memory_space<vmem>>, vector<128x4xbf16>
      %cst_12 = arith.constant dense<0.000000e+00> : vector<16x4xf32>
      %19 = tpu.matmul %1, %18, %cst_12 {dimension_numbers = #tpu.dot_dimension_numbers<[1], [0], [0], [1], [0, 0, 1, 1], [], []>} : vector<16x128xbf16>, vector<128x4xbf16>, vector<16x4xf32> -> vector<16x4xf32>
      %20 = arith.truncf %19 : vector<16x4xf32> to vector<16x4xbf16>
      %c0_13 = arith.constant 0 : index
      %c0_14 = arith.constant 0 : index
      %21 = vector.load %arg8[%c0_13, %c0_14] : memref<4x128xbf16, #tpu.memory_space<vmem>>, vector<4x128xbf16>
      %cst_15 = arith.constant dense<0.000000e+00> : vector<16x128xf32>
      %22 = tpu.matmul %20, %21, %cst_15 {dimension_numbers = #tpu.dot_dimension_numbers<[1], [0], [0], [1], [0, 0, 1, 1], [], []>} : vector<16x4xbf16>, vector<4x128xbf16>, vector<16x128xf32> -> vector<16x128xf32>
      %23 = arith.addf %8, %22 : vector<16x128xf32>
      %c0_16 = arith.constant 0 : index
      %c0_17 = arith.constant 0 : index
      %24 = vector.load %arg9[%c0_16, %c0_17] : memref<16x128xf32, #tpu.memory_space<vmem>>, vector<16x128xf32>
      tpu.vector_store %arg9[%c0_16, %c0_17], %23 {strides = array<i32>} : memref<16x128xf32, #tpu.memory_space<vmem>>, vector<16x128xf32>,
    } else {
    }
    return
  }
  func.func @transform_0(%arg0: i32, %arg1: i32) -> (i32, i32) {
    %c0_i32 = arith.constant 0 : i32
    %c0_i32_0 = arith.constant 0 : i32
    return %arg1, %c0_i32 : i32, i32
  }
  func.func @transform_1(%arg0: i32, %arg1: i32) -> (i32, i32, i32) {
    %c0_i32 = arith.constant 0 : i32
    %c0_i32_0 = arith.constant 0 : i32
    %c0_i32_1 = arith.constant 0 : i32
    return %arg0, %c0_i32, %c0_i32_0 : i32, i32, i32
  }
  func.func @transform_2(%arg0: i32, %arg1: i32) -> (i32, i32, i32) {
    %c0_i32 = arith.constant 0 : i32
    %c0_i32_0 = arith.constant 0 : i32
    %c0_i32_1 = arith.constant 0 : i32
    return %arg0, %c0_i32, %c0_i32_0 : i32, i32, i32
  }
  func.func @transform_3(%arg0: i32, %arg1: i32) -> (i32, i32) {
    %c0_i32 = arith.constant 0 : i32
    %c0_i32_0 = arith.constant 0 : i32
    %c0_i32_1 = arith.constant 0 : i32
    return %c0_i32, %c0_i32_0 : i32, i32
  }
  func.func @transform_4(%arg0: i32, %arg1: i32) -> (i32, i32) {
    %c0_i32 = arith.constant 0 : i32
    %c0_i32_0 = arith.constant 0 : i32
    %c0_i32_1 = arith.constant 0 : i32
    return %c0_i32, %c0_i32_0 : i32, i32
  }
  func.func @transform_5(%arg0: i32, %arg1: i32) -> (i32, i32) {
    %c0_i32 = arith.constant 0 : i32
    %c0_i32_0 = arith.constant 0 : i32
    %c0_i32_1 = arith.constant 0 : i32
    return %c0_i32, %c0_i32_0 : i32, i32
  }
  func.func @transform_6(%arg0: i32, %arg1: i32) -> (i32, i32) {
    %c0_i32 = arith.constant 0 : i32
    %c0_i32_0 = arith.constant 0 : i32
    %c0_i32_1 = arith.constant 0 : i32
    return %c0_i32, %c0_i32_0 : i32, i32
  }
  func.func @transform_7(%arg0: i32, %arg1: i32) -> (i32, i32) {
    %c0_i32 = arith.constant 0 : i32
    return %arg1, %arg0 : i32, i32
  }
}

</mosaic_0001>

<bundles_post_ra>
// kernel: tpu_custom_call.1
= control target key start
LH: loop header
LB: loop body
LE: loop exit
PB: predicated region body
PF: predicated region fallthrough
CT: control target
= control target key end

     0   :  { %12 = vsyncpa [#allocation3], 0  ;;  %s1573_s0 = inlined_call_operand.vmem [shape: f32[16,128], index: 0, kind: input, shape index: {}]   ;;  %s1574_s1 = inlined_call_operand.hbm [shape: bf16[3,128,128], index: 1, kind: input, shape index: {}]   ;;  %s1575_s2 = inlined_call_operand.vmem [shape: f32[3,1,128], index: 2, kind: input, shape index: {}]   ;;  %s1576_s3 = inlined_call_operand.vmem [shape: bf16[128,4], index: 3, kind: input, shape index: {}]   ;;  %s1577_s4 = inlined_call_operand.vmem [shape: bf16[4,128], index: 4, kind: input, shape index: {}]   ;;  %s1578_s5 = inlined_call_operand.vmem [shape: bf16[128,4], index: 5, kind: input, shape index: {}]   ;;  %s1579_s6 = inlined_call_operand.vmem [shape: bf16[4,128], index: 6, kind: input, shape index: {}]   ;;  %s1580_s7 = inlined_call_operand.hbm [shape: f32[16,384], index: 7, kind: output, shape index: {}]  }
   0x1   :  { %13 = vsyncpa [#allocation4], 0 }
   0x2   :  { %15 = vsyncpa [#allocation4 + $0x1], 0  ;;  %s1308_s24 = smov 0   ;;  %s1310_s25 = smov 0  }
   0x3   :  { %s1312_s26 = smov 0   ;;  %s1314_s27 = smov 0  }
   0x4   :  { %s1316_s28 = smov 0   ;;  %s1318_s29 = smov 0  }
   0x5 LB: > { %s898_s30 = sadd.s32 4294967295, %s1253_s29   ;;  %s899_s8 = sadd.s32 4294967294, %s1253_s29   ;;  %s1253_s29 = sphi %s1318_s29, %s21_s29   ;;  %s1249_s28 = sphi %s1316_s28, %s1598_s28   ;;  %s1245_s27 = sphi %s1314_s27, %s1597_s27   ;;  %s1241_s26 = sphi %s1312_s26, %s1596_s26   ;;  %s1237_s25 = sphi %s1310_s25, %s1595_s25   ;;  %s1233_s24 = sphi %s1308_s24, %s1594_s24  }
   0x6   : > { %s33_s9 = sadd.s32 1, %s1249_s28  ;;  %s66_s10 = sadd.s32 1, %s1241_s26 }
   0x7   : > { %p35_p0 = scmp.ge.s32.totalorder %s33_s9, 3  ;;  %p79_p1 = scmp.ne.s32.totalorder %s1237_s25, %s1233_s24 }
   0x8   : > { %p214_p2 = scmp.ne.s32.totalorder %s1241_s26, %s1237_s25  ;;  %p80_p3 = scmp.eq.s32.totalorder %s898_s30, 0 }
   0x9   : > { %s1600_s9 = smov (%p35_p0, %s33_s9), 0  ;;  %p215_p4 = scmp.eq.s32.totalorder %s898_s30, 2 }
   0xa   : > { %s63_s11 = ssub.s32 %s1249_s28, %s1600_s9  ;;  %p221_p5 = scmp.eq.s32.totalorder %s899_s8, 2 }
   0xb   : > { %p64_p6 = scmp.eq.s32.totalorder %s63_s11, 0  ;;  %p1350_p7 = por %p215_p4, %p214_p2 }
   0xc   : > { %p1354_p8 = por %p221_p5, %p79_p1  ;;  %p900_p9 = scmp.ge.s32.totalorder %s1253_s29, 1 }
   0xd   : > { %s1585_s12 = scalar_select %p1350_p7, 1, 0 }
   0xe   : > { %s1586_s13 = scalar_select %p1354_p8, 1, 0 }
   0xf   : > { %s1360_s14 = scalar_select %p64_p6, %s1241_s26, %s66_s10  }
  0x10   : > { %p1362_p10 = por %p80_p3, %p79_p1  ;;  %p228_p11 = scmp.lt.s32.totalorder %s1253_s29, 4 }
  0x11   : > { %s940_s16 = sshll.u32 %s1245_s27, 10  ;;  %s1255_s18 = smov [#allocation2]  }
  0x12   : > { %s1587_s15 = scalar_select %p1362_p10, 1, 0 }
  0x13   : > { %p1368_p12 = pnand %p900_p9, %p228_p11  ;;  %s252_s19 = sshll.u32 %s1255_s18, 4  ;;  %s1379_s19 = int_to_ptr.vmem [resolvable:$true] %s252_s19 }
  0x14   : > { %s1377_s22 = scalar_lea.hbm %s1574_s1, %s940_s16  ;;  %s1146_s11 = scalar_lea.hbm %s1574_s1, 3072 }
  0x15   : > { %s1588_s17 = scalar_select %p1368_p12, 1, 0 }
  0x16   : > { %p1048_p13 = pneg %p1368_p12  ;;  %s1141_s30 = scalar_lea.hbm %s1377_s22, 1024 }
  0x17   : > { %p1142_p1 = scmp.ne.s32.totalorder %s1377_s22, %s1141_s30  ;;  %p1147_p5 = scmp.lt.u32.totalorder %s1377_s22, %s1574_s1 }
  0x18   : > { %p1383_p0 = pnand %p1048_p13, %p1362_p10  ;;  %p1148_p6 = scmp.lt.u32.totalorder %s1146_s11, %s1141_s30 }
  0x19   : > { %p1150_p11 = scmp.lt.u32.totalorder %s1141_s30, %s1377_s22 }
  0x1a   : > { %p1143_p2 = pneg %p1383_p0  ;;  %p1149_p9 = por %p1148_p6, %p1147_p5 }
  0x1c   : > { %p1144_p3 = pnand %p1143_p2, %p1142_p1  ;;  %p1151_p13 = por %p1150_p11, %p1149_p9 }
  0x1e   : > { %p1145_p4 = pneg %p1144_p3 }
  0x20   : > { %p1152_p8 = pnand %p1151_p13, %p1145_p4 }
  0x22   : > { %1155 = shalt.err (!%p1152_p8)
}
  0x23   : > { %s1156_s20 = scalar_lea.vmem %s1379_s19, 1024  ;;  %p1164_p10 = scmp.lt.s32.totalorder %s1379_s19, %s1379_s19 }
  0x24   : > { %p1157_p1 = scmp.ne.s32.totalorder %s1379_s19, %s1156_s20  ;;  %p1165_p12 = scmp.lt.s32.totalorder %s1156_s20, %s1156_s20 }
  0x26   : > { %p1159_p3 = pnand %p1157_p1, %p1143_p2  ;;  %p1166_p5 = por %p1165_p12, %p1164_p10 }
  0x28   : > { %p1160_p7 = pneg %p1159_p3 }
  0x2a   : > { %p1167_p6 = pnand %p1166_p5, %p1160_p7 }
  0x2c   : > { %1170 = shalt.err (!%p1167_p6)
}
  0x2d   : > { %s1256_s21 = smov 64   ;;  %s1257_s30 = smov 4  }
  0x2e   : > { %1051 = dma.hbm_to_vmem [thread:$0]  (!%p1383_p0), %s1377_s22, 1024, %s1379_s19, [#allocation3], %s1256_s21, %s1256_s21, %s1257_s30  }
  0x2f   : > { %p1590_p8 = scmp.ne.s32.totalorder %s1588_s17, 0 }
  0x30   : > { %p1591_p4 = scmp.ne.s32.totalorder (!%p1590_p8), %s1587_s15, 0 }
  0x31   : > { %286 = sbr.rel (%p1590_p8) target bundleno = 1240 (0x4d8), region = 48 }
  0x38   : > { %1224 = dma.done.wait (%p1591_p4), [#allocation3], 1024  }
  0x39   : > { %1226 = vsyncadd (%p1591_p4), [#allocation3], 4294966272  ;;  %s318_s8 = sand.u32 1, %s1237_s25   ;;  %v1258_v0 = vmov 0.0   ;;  %vm1259_vm0 = vmmov 0   ;;  %v1117_v1 = vld [vmem:[#allocation2] sm:$0xff]  }
  0x3a   : > { %s1422_s10 = sshll.u32 %s318_s8, 4  ;;  %972 = vmatprep.subr.bf16.mxu0 %v1258_v0  ;;  %988 = vmatprep.mubr.msk.bf16.mxu0 %vm1259_vm0, %v1258_v0  ;;  %v1118_v2 = vld [vmem:[#allocation2 + $0x8] sm:$0xff]   ;;  %v1119_v3 = vld [vmem:[#allocation2 + $0x10] sm:$0xff]   ;;  %v1120_v4 = vld [vmem:[#allocation2 + $0x18] sm:$0xff]   ;;  %p327_p7 = scmp.lt.s32.totalorder %s1245_s27, 2 }
  0x3b   : > { %973 = vmatpush3.bf16.msra.mxu0 %v1117_v1  ;;  %v1121_v5 = vld [vmem:[#allocation2 + $0x20] sm:$0xff]   ;;  %v1122_v6 = vld [vmem:[#allocation2 + $0x28] sm:$0xff]   ;;  %v1123_v7 = vld [vmem:[#allocation2 + $0x30] sm:$0xff]   ;;  %s1443_s20 = scalar_lea.vmem [#allocation5], %s1422_s10  ;;  %p915_p10 = scmp.ne.s32.totalorder %s1245_s27, 0 }
  0x3c   : > { %974 = vmatprep.subr.bf16.mxu0 %v1258_v0  ;;  %v1124_v8 = vld [vmem:[#allocation2 + $0x38] sm:$0xff]   ;;  %v332_v9 = vld [vmem:[%s1573_s0] sm:$0xff]  ;;  %v333_v10 = vld [vmem:[%s1573_s0 + $0x8] sm:$0xff]  ;;  %s328_s23 = scalar_select %p327_p7, %s1245_s27, 2 }
  0x3d   : > { %v1430_v11 = vpack.c.bf16 %v333_v10, %v332_v9  ;;  %v1125_v19 = vld [vmem:[%s1576_s3] sm:$0xff] (!%p915_p10)   ;;  %v1260_v20 = vmov (!%p915_p10), 0.0   ;;  %v1126_v21 = vld [vmem:[%s1576_s3 + $0x8] sm:$0xff] (!%p915_p10)   ;;  %vm1261_vm1 = vmmov (!%p915_p10), 0   ;;  %v1127_v22 = vld [vmem:[%s1576_s3 + $0x10] sm:$0xff] (!%p915_p10)   ;;  %vm562_vm2 = vcmask (!%p915_p10), 1041408  }
  0x3e   : > { %s329_s18 = scalar_lea.vmem %s1575_s2, %s328_s23  ;;  %1012 = vmatprep.subr.bf16.mxu1 (!%p915_p10), %v1260_v20  ;;  %1014 = vmatprep.mubr.msk.bf16.mxu1 (!%p915_p10), %vm1261_vm1, %v1260_v20  ;;  %v1128_v23 = vld [vmem:[%s1576_s3 + $0x18] sm:$0xff] (!%p915_p10)   ;;  %v1129_v24 = vld [vmem:[%s1576_s3 + $0x20] sm:$0xff] (!%p915_p10)   ;;  %v1130_v25 = vld [vmem:[%s1576_s3 + $0x28] sm:$0xff] (!%p915_p10)   ;;  %vm558_vm3 = vcmask (!%p915_p10), 31744  }
  0x3f   : > { %975 = vmatpush3.bf16.msra.mxu0 %v1118_v2  ;;  %v906_v12 = vld [vmem:[%s329_s18] ss:$0 sm:$0xff]  ;;  %v1131_v26 = vld [vmem:[%s1576_s3 + $0x30] sm:$0xff] (!%p915_p10)   ;;  %v1132_v27 = vld [vmem:[%s1576_s3 + $0x38] sm:$0xff] (!%p915_p10)  }
  0x40   : > { %976 = vmatprep.subr.bf16.mxu0 %v1258_v0  ;;  %v557_v28 = vld [vmem:[%s1577_s4] sm:$0x3] (!%p915_p10) }
  0x41   : > { %v564_v29 = vsel (!%p915_p10), %vm562_vm2, %v557_v28, 0 }
  0x42   : > { %1013 = vmatpush3.bf16.msra.mxu1 (!%p915_p10), %v564_v29 }
  0x43   : > { %977 = vmatpush3.bf16.msra.mxu0 %v1119_v3 }
  0x44   : > { %978 = vmatprep.subr.bf16.mxu0 %v1258_v0 }
  0x47   : > { %979 = vmatpush3.bf16.msra.mxu0 %v1120_v4 }
  0x48   : > { %980 = vmatprep.subr.bf16.mxu0 %v1258_v0 }
  0x4b   : > { %981 = vmatpush3.bf16.msra.mxu0 %v1121_v5 }
  0x4c   : > { %982 = vmatprep.subr.bf16.mxu0 %v1258_v0 }
  0x4f   : > { %983 = vmatpush3.bf16.msra.mxu0 %v1122_v6 }
  0x50   : > { %984 = vmatprep.subr.bf16.mxu0 %v1258_v0 }
  0x53   : > { %985 = vmatpush3.bf16.msra.mxu0 %v1123_v7 }
  0x54   : > { %986 = vmatprep.subr.bf16.mxu0 %v1258_v0 }
  0x57   : > { %987 = vmatpush3.bf16.msra.mxu0 %v1124_v8 }
  0x58   : > { %992 = vmatprep.subr.bf16.mxu0 (!%p915_p10), %v1260_v20 }
  0x5a   : > { %989 = vmatmul.mubr.bf16.vlgmr.msra.gmra.mrb[0].mxu0 %v1430_v11 }
  0x5b   : > { %993 = vmatpush3.bf16.msra.mxu0 (!%p915_p10), %v1125_v19  ;;  %1008 = vmatprep.mubr.msk.bf16.mxu0 (!%p915_p10), %vm1261_vm1, %v1260_v20 }
  0x5c   : > { %994 = vmatprep.subr.bf16.mxu0 (!%p915_p10), %v1260_v20 }
  0x5f   : > { %995 = vmatpush3.bf16.msra.mxu0 (!%p915_p10), %v1126_v21 }
  0x60   : > { %996 = vmatprep.subr.bf16.mxu0 (!%p915_p10), %v1260_v20 }
  0x63   : > { %997 = vmatpush3.bf16.msra.mxu0 (!%p915_p10), %v1127_v22 }
  0x64   : > { %998 = vmatprep.subr.bf16.mxu0 (!%p915_p10), %v1260_v20 }
  0x67   : > { %999 = vmatpush3.bf16.msra.mxu0 (!%p915_p10), %v1128_v23 }
  0x68   : > { %1000 = vmatprep.subr.bf16.mxu0 (!%p915_p10), %v1260_v20 }
  0x6b   : > { %1001 = vmatpush3.bf16.msra.mxu0 (!%p915_p10), %v1129_v24 }
  0x6c   : > { %1002 = vmatprep.subr.bf16.mxu0 (!%p915_p10), %v1260_v20 }
  0x6f   : > { %1003 = vmatpush3.bf16.msra.mxu0 (!%p915_p10), %v1130_v25 }
  0x70   : > { %1004 = vmatprep.subr.bf16.mxu0 (!%p915_p10), %v1260_v20 }
  0x73   : > { %1005 = vmatpush3.bf16.msra.mxu0 (!%p915_p10), %v1131_v26 }
  0x74   : > { %1006 = vmatprep.subr.bf16.mxu0 (!%p915_p10), %v1260_v20 }
  0x77   : > { %1007 = vmatpush3.bf16.msra.mxu0 (!%p915_p10), %v1132_v27 }
 0x12a   : > { %450 = sbr.rel (%p915_p10) target bundleno = 737 (0x2e1), region = 56 }
 0x12d   : > { %v440_v13 = vpop.f32.mrb[0].mxu0 }
 0x12e   : > { %v1438_v14 = vadd.f32 %v906_v12, %v440_v13  ;;  %v990_v15 = vpop.f32.mrb[1].mxu0 }
 0x12f   : > { %v443_v16 = vpop.f32.mrb[2].mxu0 }
 0x130   : > { %v1440_v17 = vadd.f32 %v906_v12, %v443_v16  ;;  %v991_v18 = vpop.f32.mrb[3].mxu0  ;;  %1009 = vmatmul.mubr.bf16.vlgmr.msra.gmra.mrb[0].mxu0 (!%p915_p10), %v1430_v11 }
 0x203   : > { %v549_v30 = vpop.f32.mrb[0].mxu0 }
 0x204   : > { %v1010_v31 = vpop.f32.mrb[1].mxu0 }
 0x205   : > { %v552_v32 = vpop.f32.mrb[2].mxu0 }
 0x206   : > { %v556_v33 = vpack.c.bf16 %v552_v32, %v549_v30  ;;  %v1011_v34 = vpop.f32.mrb[3].mxu0 }
 0x208   : > { %1015 = vmatmul.mubr.msk.bf16.vlgmr.msra.gmra.mrb[0].mxu1 %vm558_vm3, %v556_v33 }
 0x2db   : > { %v600_v35 = vpop.f32.mrb[0].mxu1 }
 0x2dc   : > { %v607_v36 = vadd.f32 %v600_v35, %v1438_v14  ;;  %v1016_v37 = vpop.f32.mrb[1].mxu1 }
 0x2dd   : > { %v603_v38 = vpop.f32.mrb[2].mxu1 }
 0x2de   : > { %609 = vst [vmem:[%s1443_s20] sm:$0xff] %v607_v36  ;;  %v608_v39 = vadd.f32 %v603_v38, %v1440_v17  ;;  %v1017_v40 = vpop.f32.mrb[3].mxu1 }
 0x2e0   : > { %610 = vst [vmem:[%s1443_s20 + $0x8] sm:$0xff] %v608_v39 }
 0x2e1 PF: > { %p925_p12 = scmp.ne.s32.totalorder %s1245_s27, 1 }
 0x2e2   : > { %615 = vst [vmem:[%s1443_s20] sm:$0xff] (!%p925_p12), %v1438_v14  ;;  %616 = vst [vmem:[%s1443_s20 + $0x8] sm:$0xff] (!%p925_p12), %v1440_v17 }
 0x2e3   : > { %614 = sbr.rel (%p925_p12) target bundleno = 746 (0x2ea), region = 60 }
 0x2ea PF: > { %p926_p0 = scmp.ne.s32.totalorder %s1245_s27, 2 }
 0x2eb   : > { %v1133_v41 = vld [vmem:[%s1578_s5] sm:$0xff] (!%p926_p0)   ;;  %v1262_v42 = vmov (!%p926_p0), 0.0   ;;  %v1134_v43 = vld [vmem:[%s1578_s5 + $0x8] sm:$0xff] (!%p926_p0)   ;;  %vm1263_vm4 = vmmov (!%p926_p0), 0   ;;  %v1135_v44 = vld [vmem:[%s1578_s5 + $0x10] sm:$0xff] (!%p926_p0)   ;;  %vm732_vm5 = vcmask (!%p926_p0), 1041408  }
 0x2ec   : > { %620 = sbr.rel (%p926_p0) target bundleno = 1213 (0x4bd), region = 64  ;;  %1018 = vmatprep.subr.bf16.mxu0 (!%p926_p0), %v1262_v42  ;;  %1038 = vmatprep.subr.bf16.mxu1 (!%p926_p0), %v1262_v42  ;;  %v1136_v45 = vld [vmem:[%s1578_s5 + $0x18] sm:$0xff] (!%p926_p0)   ;;  %v1137_v46 = vld [vmem:[%s1578_s5 + $0x20] sm:$0xff] (!%p926_p0)   ;;  %v1138_v47 = vld [vmem:[%s1578_s5 + $0x28] sm:$0xff] (!%p926_p0)   ;;  %vm728_vm6 = vcmask (!%p926_p0), 31744  }
 0x2ed   : > { %1019 = vmatpush3.bf16.msra.mxu0 (!%p926_p0), %v1133_v41  ;;  %1034 = vmatprep.mubr.msk.bf16.mxu0 (!%p926_p0), %vm1263_vm4, %v1262_v42  ;;  %v1139_v48 = vld [vmem:[%s1578_s5 + $0x30] sm:$0xff] (!%p926_p0)   ;;  %v1140_v49 = vld [vmem:[%s1578_s5 + $0x38] sm:$0xff] (!%p926_p0)   ;;  %v727_v50 = vld [vmem:[%s1579_s6] sm:$0x3] (!%p926_p0) }
 0x2ee   : > { %1020 = vmatprep.subr.bf16.mxu0 (!%p926_p0), %v1262_v42  ;;  %1040 = vmatprep.mubr.msk.bf16.mxu1 (!%p926_p0), %vm1263_vm4, %v1262_v42  ;;  %v734_v51 = vsel (!%p926_p0), %vm732_vm5, %v727_v50, 0 }
 0x2ef   : > { %1039 = vmatpush3.bf16.msra.mxu1 (!%p926_p0), %v734_v51 }
 0x2f1   : > { %1021 = vmatpush3.bf16.msra.mxu0 (!%p926_p0), %v1134_v43 }
 0x2f2   : > { %1022 = vmatprep.subr.bf16.mxu0 (!%p926_p0), %v1262_v42 }
 0x2f5   : > { %1023 = vmatpush3.bf16.msra.mxu0 %v1135_v44 }
 0x2f6   : > { %1024 = vmatprep.subr.bf16.mxu0 %v1262_v42 }
 0x2f9   : > { %1025 = vmatpush3.bf16.msra.mxu0 %v1136_v45 }
 0x2fa   : > { %1026 = vmatprep.subr.bf16.mxu0 %v1262_v42 }
 0x2fd   : > { %1027 = vmatpush3.bf16.msra.mxu0 %v1137_v46 }
 0x2fe   : > { %1028 = vmatprep.subr.bf16.mxu0 %v1262_v42 }
 0x301   : > { %1029 = vmatpush3.bf16.msra.mxu0 %v1138_v47 }
 0x302   : > { %1030 = vmatprep.subr.bf16.mxu0 %v1262_v42 }
 0x305   : > { %1031 = vmatpush3.bf16.msra.mxu0 %v1139_v48 }
 0x306   : > { %1032 = vmatprep.subr.bf16.mxu0 %v1262_v42 }
 0x309   : > { %1033 = vmatpush3.bf16.msra.mxu0 %v1140_v49 }
 0x30c   : > { %1035 = vmatmul.mubr.bf16.vlgmr.msra.gmra.mrb[0].mxu0 %v1430_v11 }
 0x3df   : > { %v719_v52 = vpop.f32.mrb[0].mxu0 }
 0x3e0   : > { %v1036_v53 = vpop.f32.mrb[1].mxu0 }
 0x3e1   : > { %v722_v54 = vpop.f32.mrb[2].mxu0 }
 0x3e2   : > { %v726_v55 = vpack.c.bf16 %v722_v54, %v719_v52  ;;  %v1037_v56 = vpop.f32.mrb[3].mxu0 }
 0x3e4   : > { %1041 = vmatmul.mubr.msk.bf16.vlgmr.msra.gmra.mrb[0].mxu1 %vm728_vm6, %v726_v55 }
 0x4b7   : > { %v770_v57 = vpop.f32.mrb[0].mxu1 }
 0x4b8   : > { %v777_v58 = vadd.f32 %v770_v57, %v1438_v14  ;;  %v1042_v59 = vpop.f32.mrb[1].mxu1 }
 0x4b9   : > { %v773_v60 = vpop.f32.mrb[2].mxu1 }
 0x4ba   : > { %779 = vst [vmem:[%s1443_s20] sm:$0xff] %v777_v58  ;;  %v778_v61 = vadd.f32 %v773_v60, %v1440_v17  ;;  %v1043_v62 = vpop.f32.mrb[3].mxu1 }
 0x4bc   : > { %780 = vst [vmem:[%s1443_s20 + $0x8] sm:$0xff] %v778_v61 }
 0x4bd PF: > { %s937_s17 = sshll.u32 %s1245_s27, 7  ;;  %s797_s23 = sshll.u32 %s1443_s20, 4  ;;  %s1523_s23 = int_to_ptr.vmem [resolvable:$true] %s797_s23 }
 0x4be   : > { %s1520_s22 = scalar_lea.hbm %s1580_s7, %s937_s17  ;;  %s1527_s11 = scalar_lea.sflag [#allocation4], %s318_s8 }
 0x4bf   : > { %s1171_s16 = scalar_lea.vmem %s1523_s23, 256  ;;  %p1592_p9 = scmp.ne.s32.totalorder %s1585_s12, 0 }
 0x4c0   : > { %p1172_p2 = scmp.ne.s32.totalorder %s1523_s23, %s1171_s16  ;;  %s1264_s27 = smov [#allocation5]  }
 0x4c1   : > { %s1175_s18 = sshll.u32 %s1264_s27, 4  ;;  %s1176_s18 = int_to_ptr.vmem [resolvable:$false] %s1175_s18 }
 0x4c2   : > { %p1173_p11 = pnand %p1172_p2, %p1592_p9  ;;  %s1177_s21 = scalar_lea.vmem %s1176_s18, 512 }
 0x4c3   : > { %p1178_p1 = scmp.lt.s32.totalorder %s1523_s23, %s1176_s18  ;;  %p1179_p3 = scmp.lt.s32.totalorder %s1177_s21, %s1171_s16 }
 0x4c4   : > { %p1174_p13 = pneg %p1173_p11 }
 0x4c5   : > { %p1180_p5 = por %p1179_p3, %p1178_p1 }
 0x4c7   : > { %p1181_p6 = pnand %p1180_p5, %p1174_p13 }
 0x4c9   : > { %1184 = shalt.err (!%p1181_p6)
}
 0x4ca   : > { %s1185_s8 = scalar_lea.hbm %s1520_s22, 256  ;;  %s1189_s15 = scalar_lea.hbm %s1580_s7, 768 }
 0x4cb   : > { %p1186_p8 = scmp.ne.s32.totalorder %s1520_s22, %s1185_s8  ;;  %p1190_p10 = scmp.lt.u32.totalorder %s1520_s22, %s1580_s7 }
 0x4cc   : > { %p1191_p12 = scmp.lt.u32.totalorder %s1189_s15, %s1185_s8  ;;  %p1193_p2 = scmp.lt.u32.totalorder %s1185_s8, %s1520_s22 }
 0x4cd   : > { %p1187_p4 = pnand %p1186_p8, %p1592_p9 }
 0x4ce   : > { %p1192_p0 = por %p1191_p12, %p1190_p10 }
 0x4cf   : > { %p1188_p7 = pneg %p1187_p4 }
 0x4d0   : > { %p1194_p11 = por %p1193_p2, %p1192_p0 }
 0x4d2   : > { %p1195_p13 = pnand %p1194_p11, %p1188_p7 }
 0x4d4   : > { %1198 = shalt.err (!%p1195_p13)
}
 0x4d5   : > { %s1265_s19 = smov 128   ;;  %s1266_s16 = smov 384  }
 0x4d6   : > { %s1267_s27 = smov 8  }
 0x4d7   : > { %1046 = dma.vmem_to_hbm [thread:$0]  (%p1592_p9), %s1523_s23, 256, %s1520_s22, %s1527_s11, %s1265_s19, %s1266_s16, %s1267_s27  }
 0x4d8 PF: > { %p1056_p1 = scmp.ge.s32.totalorder %s1253_s29, 2  ;;  %s812_s18 = sand.u32 1, %s1233_s24  }
 0x4d9   : > { %p1593_p3 = scmp.ne.s32.totalorder %s1586_s13, 0  ;;  %s813_s21 = scalar_lea.sflag [#allocation4], %s812_s18 }
 0x4db   : > { %p1053_p5 = pnand %p1056_p1, %p1593_p3 }
 0x4dd   : > { %1228 = dma.done.wait (!%p1053_p5), %s813_s21, 256  }
 0x4de   : > { %1230 = vsyncadd (!%p1053_p5), %s813_s21, 4294967040  ;;  %s21_s29 = sadd.s32 1, %s1253_s29   ;;  %s1594_s24 = smov %s1237_s25 }
 0x4df   : > { %p18_p6 = scmp.ge.s32.totalorder %s21_s29, 5   ;;  %s1595_s25 = smov %s1241_s26 }
 0x4e0   : > { %s1596_s26 = smov %s1360_s14  ;;  %s1597_s27 = smov %s1249_s28 }
 0x4e1   : > { %s1598_s28 = smov %s1600_s9  ;;  %20 = sbr.rel (!%p18_p6) target bundleno = 5 (0x5), region = 104 }
 0x4e8   :  { %818 = vsyncpa [#allocation3], 1 }
 0x4e9   :  { %820 = vsyncpa [#allocation3 + $0x1], 1 }
 0x4ea   :  { %821 = vsyncpa [#allocation4], 1 }
 0x4eb   :  { %823 = vsyncpa [#allocation4 + $0x1], 1 }

</bundles_post_ra>
